<compile_context>
chip_gen: v7x
topology: tpu7x:2x2x1
jax: 0.10.0
libtpu: 0.0.40
codegen_flags: <defaults>
</compile_context>

<pallas_src>
import jax
import jax.numpy as jnp
from jax.experimental import pallas as pl
from jax.experimental.pallas import tpu as pltpu


# ----------------------------- Pallas kernel ------------------------------- #

def _upconv_kernel(xp_ref, w_ref, b_ref, o_ref):
    # xp_ref: (H+2, (W+2)*Ci)  zero-padded original-res input, lane-dense,
    #         resident in VMEM across the H-tile grid axis.
    # w_ref : (3*(W+2)*Ci, W*4*Co) row-Toeplitz, phase-collapsed conv weights
    #         with the BN scale folded in.
    # b_ref : (1, W*4*Co) pre-tiled folded bias row.
    # o_ref : (TH, W*4*Co) output tile; lanes ordered (j, a, b, co) where the
    #         final pixel is out[2*i+a, 2*j+b, co].
    th = o_ref.shape[0]
    i0 = pl.multiple_of(pl.program_id(1) * th, th)

    # Three vertically shifted row bands, concatenated along the lane axis ->
    # one lane-dense LHS; a single MXU matmul then does all 9 taps, all 4
    # upsample phases and the Ci->Co channel mixing at once.
    lhs = jnp.concatenate(
        [xp_ref[pl.ds(i0 + dv, th), :] for dv in range(3)], axis=1)
    z = jnp.dot(lhs, w_ref[...], preferred_element_type=jnp.float32)
    o_ref[...] = jnp.maximum(z + b_ref[...], 0.0).astype(o_ref.dtype)


# --------------------------- weight preparation ----------------------------- #

def _phase_collapsed_weights(w):
    """(3,3,Ci,Co) conv weights -> (3,3,Ci,4*Co) phase-collapsed weights.

    Identity: a 3x3 conv over a nearest-2x upsampled image equals, for each
    output phase (a, b) in {0,1}^2, a conv over the ORIGINAL zero-padded input
    with vertically / horizontally collapsed taps.
    """
    def collapse(t, phase):          # collapse the leading length-3 tap axis
        z = jnp.zeros_like(t[:1])
        if phase == 0:               # taps land on padded offsets {0, 1}
            return jnp.concatenate([t[:1], t[1:2] + t[2:3], z], axis=0)
        return jnp.concatenate([z, t[:1] + t[1:2], t[2:3]], axis=0)

    phases = []
    for a in range(2):
        va = collapse(w, a)                                       # vertical
        for b in range(2):
            vb = jnp.swapaxes(collapse(jnp.swapaxes(va, 0, 1), b), 0, 1)
            phases.append(vb)                                     # horizontal
    wm = jnp.stack(phases, axis=-2)           # (3, 3, Ci, 4, Co), p = a*2 + b
    return wm.reshape(3, 3, w.shape[2], 4 * w.shape[3])


def _row_toeplitz_weights(wm, W):
    """Embed (3,3,Ci,4Co) phase weights into (3*(W+2)*Ci, W*4*Co) so one
    matmul of a (TH, 3*(W+2)*Ci) padded row band yields a full lane-dense
    output row ordered (j, a, b, co)."""
    _, _, Ci, Co4 = wm.shape
    wrow = jnp.zeros((3, W + 2, Ci, W, Co4), wm.dtype)
    for dv in range(3):
        for dh in range(3):
            e = jnp.eye(W + 2, W, k=-dh, dtype=wm.dtype)    # j' == j + dh
            wrow = wrow.at[dv].add(jnp.einsum('pj,cd->pcjd', e, wm[dv, dh]))
    return wrow.reshape(3 * (W + 2) * Ci, W * Co4)


# ------------------------------- wrapper ------------------------------------ #

def up_conv(x_nchw, params, eps=1e-5):
    """nn.Upsample(2) -> Conv2d(3x3, pad=1, bias) -> BatchNorm2d -> ReLU."""
    N, Ci, H, W = x_nchw.shape
    Co = params["w"].shape[-1]
    TH = 8 if H % 8 == 0 else H              # original rows per grid tile

    # NCHW -> NHWC, 1-pixel zero halo at ORIGINAL resolution, flatten into a
    # lane-dense (rows, (W+2)*Ci) slab.  The 2x-upsampled image is never
    # materialized in HBM.
    x = jnp.transpose(x_nchw, (0, 2, 3, 1))
    xp = jnp.pad(x, ((0, 0), (1, 1), (1, 1), (0, 0)))
    xp = xp.reshape(N, H + 2, (W + 2) * Ci)

    # Fold BatchNorm (inference affine) into the conv weights / bias.
    scale = params["gamma"] * jax.lax.rsqrt(params["var"] + eps)
    w_f = params["w"] * scale[None, None, None, :]
    b_f = (params["b"] - params["mean"]) * scale + params["beta"]

    wm = _phase_collapsed_weights(w_f)                  # (3, 3, Ci, 4*Co)
    w_row = _row_toeplitz_weights(wm, W)                # (3*(W+2)*Ci, W*4*Co)
    b_row = jnp.tile(b_f, W * 4).reshape(1, W * 4 * Co)

    out = pl.pallas_call(
        _upconv_kernel,
        out_shape=jax.ShapeDtypeStruct((N, H, W * 4 * Co), x.dtype),
        grid=(N, H // TH),
        in_specs=[
            pl.BlockSpec((pl.Squeezed(), H + 2, (W + 2) * Ci),
                         lambda n, t: (n, 0, 0)),
            pl.BlockSpec((3 * (W + 2) * Ci, W * 4 * Co), lambda n, t: (0, 0)),
            pl.BlockSpec((1, W * 4 * Co), lambda n, t: (0, 0)),
        ],
        out_specs=pl.BlockSpec((pl.Squeezed(), TH, W * 4 * Co),
                               lambda n, t: (n, t, 0)),
        compiler_params=pltpu.CompilerParams(
            dimension_semantics=("parallel", "parallel"),
            vmem_limit_bytes=32 * 1024 * 1024),
    )(xp, w_row, b_row)

    # Untangle lanes (j, a, b, co) and return NCHW in ONE fused transpose
    # (the transpose is required by the PyTorch io contract anyway).
    out = out.reshape(N, H, W, 2, 2, Co)                # (n, i, j, a, b, co)
    out = jnp.transpose(out, (0, 5, 1, 3, 2, 4))        # (n, co, i, a, j, b)
    return out.reshape(N, Co, 2 * H, 2 * W)


# ------------------------- parameter initialization ------------------------- #

def init_params(key, ch_in, ch_out):
    ks = jax.random.split(key, 6)
    w = 0.1 * jax.random.normal(ks[0], (3, 3, ch_in, ch_out), jnp.float32)
    b = 0.05 * jax.random.normal(ks[1], (ch_out,), jnp.float32)
    gamma = 1.0 + 0.1 * jax.random.normal(ks[2], (ch_out,), jnp.float32)
    beta = 0.1 * jax.random.normal(ks[3], (ch_out,), jnp.float32)
    mean = 0.1 * jax.random.normal(ks[4], (ch_out,), jnp.float32)
    var = jnp.abs(1.0 + 0.1 * jax.random.normal(ks[5], (ch_out,), jnp.float32))
    return {"w": w, "b": b, "gamma": gamma, "beta": beta,
            "mean": mean, "var": var}


# ----------------------------- pure-JAX reference --------------------------- #

def up_conv_ref(x_nchw, params, eps=1e-5):
    x = jnp.transpose(x_nchw, (0, 2, 3, 1))
    x = jnp.repeat(jnp.repeat(x, 2, axis=1), 2, axis=2)
    y = jax.lax.conv_general_dilated(
        x, params["w"], window_strides=(1, 1), padding="SAME",
        dimension_numbers=("NHWC", "HWIO", "NHWC"))
    y = y + params["b"][None, None, None, :]
    scale = params["gamma"] * jax.lax.rsqrt(params["var"] + eps)
    y = (y - params["mean"][None, None, None, :]) * scale[None, None, None, :] \
        + params["beta"][None, None, None, :]
    y = jnp.maximum(y, 0.0)
    return jnp.transpose(y, (0, 3, 1, 2))


# ---------------------------------- main ------------------------------------ #

if __name__ == "__main__":
    N, CH_IN, CH_OUT, H, W = 2, 4, 8, 16, 16

    key = jax.random.PRNGKey(0)
    kx, kp = jax.random.split(key)
    x = jax.random.normal(kx, (N, CH_IN, H, W), jnp.float32)   # NCHW input
    params = init_params(kp, CH_IN, CH_OUT)

    out = jax.block_until_ready(up_conv(x, params))
    ref = jax.block_until_ready(up_conv_ref(x, params))

    assert out.shape == (N, CH_OUT, 2 * H, 2 * W), out.shape
    assert jnp.allclose(out, ref, atol=2e-3, rtol=2e-3), \
        float(jnp.max(jnp.abs(out - ref)))

    print("KERNEL_OK")
</pallas_src>

<mosaic_0001>
module attributes {stable_mosaic.version = 11 : i64} {
  func.func @_upconv_kernel(%arg0: i32, %arg1: i32, %arg2: memref<1x18x72xf32, #tpu.memory_space<vmem>>, %arg3: memref<216x512xf32, #tpu.memory_space<vmem>>, %arg4: memref<1x512xf32, #tpu.memory_space<vmem>>, %arg5: memref<1x8x512xf32, #tpu.memory_space<vmem>>) attributes {dimension_semantics = [#tpu.dimension_semantics<parallel>, #tpu.dimension_semantics<parallel>], iteration_bounds = array<i64: 2, 2>, scalar_prefetch = 0 : i64, scratch_operands = 0 : i64, tpu.core_type = #tpu.core_type<tc>, window_params = [{transform_indices = @transform_0, window_bounds = array<i64: 1, 18, 72>}, {pipeline_mode = #tpu.pipeline_mode<synchronous>, transform_indices = @transform_1, window_bounds = array<i64: 216, 512>}, {pipeline_mode = #tpu.pipeline_mode<synchronous>, transform_indices = @transform_2, window_bounds = array<i64: 1, 512>}, {transform_indices = @transform_3, window_bounds = array<i64: 1, 8, 512>}]} {
    %c8_i32 = arith.constant 8 : i32
    %0 = arith.muli %arg1, %c8_i32 : i32
    %1 = tpu.assume_multiple %0, 8 : i32
    %c0_i32 = arith.constant 0 : i32
    %2 = arith.addi %1, %c0_i32 : i32
    %c0 = arith.constant 0 : index
    %3 = arith.index_cast %2 : i32 to index
    %c0_0 = arith.constant 0 : index
    %4 = vector.load %arg2[%c0, %3, %c0_0] : memref<1x18x72xf32, #tpu.memory_space<vmem>>, vector<1x8x72xf32>
    %5 = vector.shape_cast %4 : vector<1x8x72xf32> to vector<8x72xf32>
    %c1_i32 = arith.constant 1 : i32
    %6 = arith.addi %1, %c1_i32 : i32
    %c0_1 = arith.constant 0 : index
    %7 = arith.index_cast %6 : i32 to index
    %c0_2 = arith.constant 0 : index
    %8 = vector.load %arg2[%c0_1, %7, %c0_2] : memref<1x18x72xf32, #tpu.memory_space<vmem>>, vector<1x8x72xf32>
    %9 = vector.shape_cast %8 : vector<1x8x72xf32> to vector<8x72xf32>
    %c2_i32 = arith.constant 2 : i32
    %10 = arith.addi %1, %c2_i32 : i32
    %c0_3 = arith.constant 0 : index
    %11 = arith.index_cast %10 : i32 to index
    %c0_4 = arith.constant 0 : index
    %12 = vector.load %arg2[%c0_3, %11, %c0_4] : memref<1x18x72xf32, #tpu.memory_space<vmem>>, vector<1x8x72xf32>
    %13 = vector.shape_cast %12 : vector<1x8x72xf32> to vector<8x72xf32>
    %14 = tpu.concatenate %5, %9, %13 in 1 : vector<8x72xf32>, vector<8x72xf32>, vector<8x72xf32> -> vector<8x216xf32>
    %c0_5 = arith.constant 0 : index
    %c0_6 = arith.constant 0 : index
    %15 = vector.load %arg3[%c0_5, %c0_6] : memref<216x512xf32, #tpu.memory_space<vmem>>, vector<216x512xf32>
    %cst = arith.constant dense<0.000000e+00> : vector<8x512xf32>
    %16 = tpu.matmul %14, %15, %cst {dimension_numbers = #tpu.dot_dimension_numbers<[1], [0], [0], [1], [0, 0, 1, 1], [], []>} : vector<8x216xf32>, vector<216x512xf32>, vector<8x512xf32> -> vector<8x512xf32>
    %c0_7 = arith.constant 0 : index
    %c0_8 = arith.constant 0 : index
    %17 = vector.load %arg4[%c0_7, %c0_8] : memref<1x512xf32, #tpu.memory_space<vmem>>, vector<1x512xf32>
    %18 = vector.broadcast %17 : vector<1x512xf32> to vector<8x512xf32>
    %19 = arith.addf %16, %18 : vector<8x512xf32>
    %cst_9 = arith.constant 0.000000e+00 : f32
    %20 = vector.broadcast %cst_9 : f32 to vector<8x512xf32>
    %21 = arith.maximumf %19, %20 : vector<8x512xf32>
    %c0_10 = arith.constant 0 : index
    %c0_11 = arith.constant 0 : index
    %c0_12 = arith.constant 0 : index
    %22 = vector.load %arg5[%c0_10, %c0_11, %c0_12] : memref<1x8x512xf32, #tpu.memory_space<vmem>>, vector<1x8x512xf32>
    %23 = vector.shape_cast %22 : vector<1x8x512xf32> to vector<8x512xf32>
    %24 = vector.shape_cast %21 : vector<8x512xf32> to vector<1x8x512xf32>
    tpu.vector_store %arg5[%c0_10, %c0_11, %c0_12], %24 {strides = array<i32>} : memref<1x8x512xf32, #tpu.memory_space<vmem>>, vector<1x8x512xf32>,
    return
  }
  func.func @transform_0(%arg0: i32, %arg1: i32) -> (i32, i32, i32) {
    %c0_i32 = arith.constant 0 : i32
    %c0_i32_0 = arith.constant 0 : i32
    %c0_i32_1 = arith.constant 0 : i32
    return %arg0, %c0_i32, %c0_i32_0 : i32, i32, i32
  }
  func.func @transform_1(%arg0: i32, %arg1: i32) -> (i32, i32) {
    %c0_i32 = arith.constant 0 : i32
    %c0_i32_0 = arith.constant 0 : i32
    %c0_i32_1 = arith.constant 0 : i32
    return %c0_i32, %c0_i32_0 : i32, i32
  }
  func.func @transform_2(%arg0: i32, %arg1: i32) -> (i32, i32) {
    %c0_i32 = arith.constant 0 : i32
    %c0_i32_0 = arith.constant 0 : i32
    %c0_i32_1 = arith.constant 0 : i32
    return %c0_i32, %c0_i32_0 : i32, i32
  }
  func.func @transform_3(%arg0: i32, %arg1: i32) -> (i32, i32, i32) {
    %c0_i32 = arith.constant 0 : i32
    %c0_i32_0 = arith.constant 0 : i32
    return %arg0, %arg1, %c0_i32 : i32, i32, i32
  }
}

</mosaic_0001>

<bundles_post_ra>
// kernel: tpu_custom_call.1
= control target key start
LH: loop header
LB: loop body
LE: loop exit
PB: predicated region body
PF: predicated region fallthrough
CT: control target
= control target key end

     0   :  { %8 = vsyncpa [#allocation3], 0  ;;  %s1166_s0 = inlined_call_operand.vmem [shape: f32[2,18,72], index: 0, kind: input, shape index: {}]   ;;  %s1167_s1 = inlined_call_operand.hbm [shape: f32[216,512], index: 1, kind: input, shape index: {}]   ;;  %s1168_s2 = inlined_call_operand.vmem [shape: f32[1,512], index: 2, kind: input, shape index: {}]   ;;  %s1169_s3 = inlined_call_operand.hbm [shape: f32[2,16,512], index: 3, kind: output, shape index: {}]  }
   0x1   :  { %9 = vsyncpa [#allocation4], 0 }
   0x2   :  { %11 = vsyncpa [#allocation4 + $0x1], 0  ;;  %s980_s12 = smov 0   ;;  %s982_s13 = smov 0  }
   0x3   :  { %s984_s14 = smov 0   ;;  %s986_s15 = smov 0  }
   0x4   :  { %s988_s16 = smov 0   ;;  %s990_s17 = smov 0  }
   0x5   :  { %s992_s18 = smov 0   ;;  %s994_s19 = smov 0  }
   0x6 LB: > { %s613_s20 = sadd.s32 4294967295, %s952_s19   ;;  %s614_s21 = sadd.s32 4294967294, %s952_s19   ;;  %s952_s19 = sphi %s994_s19, %s17_s19   ;;  %s948_s18 = sphi %s992_s18, %s1189_s18   ;;  %s944_s17 = sphi %s990_s17, %s1188_s17   ;;  %s940_s16 = sphi %s988_s16, %s1187_s16   ;;  %s936_s15 = sphi %s986_s15, %s1186_s15   ;;  %s932_s14 = sphi %s984_s14, %s1185_s14   ;;  %s928_s13 = sphi %s982_s13, %s1184_s13   ;;  %s924_s12 = sphi %s980_s12, %s1183_s12  }
   0x7   : > { %s26_s22 = sadd.s32 1, %s944_s17  ;;  %s29_s23 = sadd.s32 1, %s948_s18 }
   0x8   : > { %p27_p0 = scmp.ge.s32.totalorder %s26_s22, 2  ;;  %s106_s24 = sadd.s32 1, %s932_s14 }
   0x9   : > { %p116_p1 = scmp.ne.s32.totalorder %s932_s14, %s928_s13  ;;  %p117_p2 = scmp.eq.s32.totalorder %s613_s20, 3 }
   0xa   : > { %s1191_s22 = smov (%p27_p0, %s26_s22), 0  ;;  %s1193_s23 = smov (!%p27_p0, %s29_s23), %s948_s18 }
   0xb   : > { %s102_s25 = ssub.s32 %s944_s17, %s1191_s22  ;;  %p1032_p3 = por %p117_p2, %p116_p1 }
   0xc   : > { %p31_p4 = scmp.ge.s32.totalorder %s1193_s23, 2  ;;  %p122_p5 = scmp.ne.s32.totalorder %s928_s13, %s924_s12 }
   0xd   : > { %s1174_s26 = scalar_select %p1032_p3, 1, 0 }
   0xe   : > { %p123_p6 = scmp.eq.s32.totalorder %s614_s21, 3  ;;  %p615_p7 = scmp.ge.s32.totalorder %s952_s19, 1 }
   0xf   : > { %s1195_s23 = smov (%p31_p4, %s1193_s23), 0  ;;  %p130_p9 = scmp.lt.s32.totalorder %s952_s19, 5 }
  0x10   : > { %p1041_p8 = por %p123_p6, %p122_p5  ;;  %s101_s28 = ssub.s32 %s948_s18, %s1195_s23 }
  0x11   : > { %s103_s29 = sor.u32 %s102_s25, %s101_s28  ;;  %p1048_p10 = pnand %p615_p7, %p130_p9 }
  0x12   : > { %s1175_s27 = scalar_select %p1041_p8, 1, 0 }
  0x13   : > { %s1176_s30 = scalar_select %p1048_p10, 1, 0 }
  0x14   : > { %p104_p11 = scmp.eq.s32.totalorder %s103_s29, 0  ;;  %p1052_p12 = scmp.eq.s32.totalorder %s613_s20, 0 }
  0x15   : > { %p746_p13 = pneg %p1048_p10  ;;  %s954_s6 = smov [#allocation2]  }
  0x16   : > { %s1177_s4 = scalar_select %p1052_p12, 1, 0 }
  0x17   : > { %s1059_s5 = scalar_select %p104_p11, %s932_s14, %s106_s24  }
  0x18   : > { %s142_s7 = sshll.u32 %s954_s6, 4  ;;  %p1063_p0 = pnand %p1052_p12, %p746_p13  ;;  %s143_s7 = int_to_ptr.vmem [resolvable:$true] %s142_s7 }
  0x19   : > { %s826_s11 = scalar_lea.hbm %s1167_s1, 13824 }
  0x1a   : > { %p827_p1 = scmp.ne.s32.totalorder %s1167_s1, %s826_s11  ;;  %p828_p2 = pneg %p1063_p0 }
  0x1b   : > { %p833_p6 = scmp.lt.u32.totalorder %s826_s11, %s1167_s1 }
  0x1c   : > { %p829_p4 = pnand %p828_p2, %p827_p1 }
  0x1e   : > { %p830_p5 = pneg %p829_p4 }
  0x20   : > { %p835_p7 = pnand %p833_p6, %p830_p5 }
  0x22   : > { %838 = shalt.err (!%p835_p7)
}
  0x23   : > { %s839_s28 = scalar_lea.vmem %s143_s7, 13824  ;;  %p847_p8 = scmp.lt.s32.totalorder %s143_s7, %s143_s7 }
  0x24   : > { %p840_p9 = scmp.ne.s32.totalorder %s143_s7, %s839_s28  ;;  %p848_p3 = scmp.lt.s32.totalorder %s839_s28, %s839_s28 }
  0x26   : > { %p842_p11 = pnand %p840_p9, %p828_p2  ;;  %p849_p12 = por %p848_p3, %p847_p8 }
  0x28   : > { %p843_p13 = pneg %p842_p11 }
  0x2a   : > { %p850_p10 = pnand %p849_p12, %p843_p13 }
  0x2c   : > { %853 = shalt.err (!%p850_p10)
}
  0x2d   : > { %s955_s29 = smov 512   ;;  %s956_s6 = smov 32  }
  0x2e   : > { %749 = dma.hbm_to_vmem [thread:$0]  (!%p1063_p0), %s1167_s1, 13824, %s143_s7, [#allocation3], %s955_s29, %s955_s29, %s956_s6  }
  0x2f   : > { %p1179_p1 = scmp.ne.s32.totalorder %s1176_s30, 0 }
  0x30   : > { %p1180_p4 = scmp.ne.s32.totalorder (!%p1179_p1), %s1177_s4, 0 }
  0x31   : > { %169 = sbr.rel (%p1179_p1) target bundleno = 418 (0x1a2), region = 32 }
  0x38   : > { %915 = dma.done.wait (%p1180_p4), [#allocation3], 13824  }
  0x39   : > { %917 = vsyncadd (%p1180_p4), [#allocation3], 4294953472  ;;  %p193_p3 = scmp.lt.s32.totalorder %s940_s16, 1  ;;  %s622_s8 = sshll.u32 %s936_s15, 3  ;;  %v220_v0 = vld [vmem:[#allocation2 + $0x8] sm:$0xff]  ;;  %v222_v2 = vld [vmem:[#allocation2 + $0x18] sm:$0xff] }
  0x3a   : > { %v224_v1 = vld [vmem:[#allocation2 + $0x28] sm:$0xff]  ;;  %v226_v6 = vld [vmem:[#allocation2 + $0x38] sm:$0xff]  ;;  %s957_s30 = smov 72   ;;  %v219_v8 = vld [vmem:[#allocation2] sm:$0xff]  ;;  %s958_s4 = smov 16   ;;  %vm217_vm0 = vcmask 130048  }
  0x3b   : > { %s194_s11 = scalar_select %p193_p3, %s940_s16, 1  ;;  %v635_v5 = vpack.c.bf16 %v224_v1, %v220_v0  ;;  %v687_v7 = vpack.c.bf16 %v226_v6, %v222_v2  ;;  %v223_v9 = vld [vmem:[#allocation2 + $0x20] sm:$0xff]  ;;  %v221_v10 = vld [vmem:[#allocation2 + $0x10] sm:$0xff]  ;;  %v228_v13 = vld [vmem:[#allocation2 + $0x48] sm:$0xff]  ;;  %vm349_vm1 = vcmask 719872   ;;  %vm215_vm2 = vcmask 588800  }
  0x3c   : > { %v637_v11 = vpack.c.bf16 %v223_v9, %v219_v8  ;;  %v225_v12 = vld [vmem:[#allocation2 + $0x30] sm:$0xff]  ;;  %v232_v14 = vld [vmem:[#allocation2 + $0x68] sm:$0xff]  ;;  %v230_v17 = vld [vmem:[#allocation2 + $0x58] sm:$0xff]  ;;  %s190_s28 = sand.u32 1, %s928_s13   ;;  %s630_s10 = sshll.u32 %s936_s15, 2 }
  0x3d   : > { %s739_s20 = smul.u32 24, %s194_s11  ;;  %636 = vmatprep.subr.bf16.mxu0 %v635_v5  ;;  %688 = vmatprep.subr.bf16.mxu1 %v687_v7  ;;  %v689_v15 = vpack.c.bf16 %v225_v12, %v221_v10  ;;  %v639_v16 = vpack.c.bf16 %v232_v14, %v228_v13  ;;  %v234_v18 = vld [vmem:[#allocation2 + $0x78] sm:$0xff]  ;;  %v227_v19 = vld [vmem:[#allocation2 + $0x40] sm:$0xff]  ;;  %v229_v22 = vld [vmem:[#allocation2 + $0x50] sm:$0xff]  ;;  %s620_s29 = sshll.u32 %s190_s28, 5 }
  0x3e   : > { %638 = vmatpush1.bf16.msra.mxu0 %v637_v11  ;;  %v691_v20 = vpack.c.bf16 %v234_v18, %v230_v17  ;;  %v231_v21 = vld [vmem:[#allocation2 + $0x60] sm:$0xff]  ;;  %v233_v23 = vld [vmem:[#allocation2 + $0x70] sm:$0xff]  ;;  %v236_v26 = vld [vmem:[#allocation2 + $0x88] sm:$0xff]  ;;  %s631_s11 = sshll.u32 %s940_s16, 3  ;;  %s192_s21 = scalar_lea.vmem [#allocation5], %s620_s29 }
  0x3f   : > { %s197_s7 = scalar_lea.vmem %s1166_s0, %s739_s20  ;;  %690 = vmatpush1.bf16.msra.mxu1 %v689_v15  ;;  %v641_v24 = vpack.c.bf16 %v231_v21, %v227_v19  ;;  %v693_v25 = vpack.c.bf16 %v233_v23, %v229_v22  ;;  %v240_v27 = vld [vmem:[#allocation2 + $0xa8] sm:$0xff]  ;;  %v238_v28 = vld [vmem:[#allocation2 + $0x98] sm:$0xff]  ;;  %640 = vmatprep.subr.bf16.mxu0 %v639_v16  ;;  %v235_v31 = vld [vmem:[#allocation2 + $0x80] sm:$0xff]  ;;  %s516_s20 = sadd.s32 %s631_s11, %s630_s10 }
  0x40   : > { %s1095_s25 = scalar_lea.vmem %s197_s7, %s622_s8  ;;  %692 = vmatprep.subr.bf16.mxu1 %v691_v20  ;;  %v643_v29 = vpack.c.bf16 %v240_v27, %v236_v26  ;;  %v242_v30 = vld [vmem:[#allocation2 + $0xb8] sm:$0xff]  ;;  %v239_v32 = vld [vmem:[#allocation2 + $0xa0] sm:$0xff]  ;;  %v237_v34 = vld [vmem:[#allocation2 + $0x90] sm:$0xff]  ;;  %s632_s8 = sshll.u32 %s516_s20, 7 }
  0x41   : > { %v624_v3 = vld [vmem:[%s1095_s25 + $0x1] sm:$0xff]  ;;  %v695_v33 = vpack.c.bf16 %v242_v30, %v238_v28  ;;  %v244_v36 = vld [vmem:[#allocation2 + $0xc8] sm:$0xff]  ;;  %v645_v37 = vpack.c.bf16 %v239_v32, %v235_v31  ;;  %v243_v43 = vld [vmem:[#allocation2 + $0xc0] sm:$0xff]  ;;  %s520_s24 = sshll.u32 %s192_s21, 4  ;;  %s1111_s7 = scalar_lea.hbm %s1169_s3, %s632_s8  ;;  %s1113_s24 = int_to_ptr.vmem [resolvable:$true] %s520_s24 }
  0x42   : > { %v626_v4 = vld [vmem:[%s1095_s25 + $0x2] sm:$0xff]  ;;  %208 = vrot.lane.b32.xlu0 %v624_v3, %s957_s30  ;;  %642 = vmatpush1.bf16.msra.mxu0 %v641_v24  ;;  %v248_v38 = vld [vmem:[#allocation2 + $0xe8] sm:$0xff]  ;;  %v247_v44 = vld [vmem:[#allocation2 + $0xe0] sm:$0xff]  ;;  %s854_s30 = scalar_lea.vmem %s1113_s24, 512  ;;  %p1181_p10 = scmp.ne.s32.totalorder %s1174_s26, 0 }
  0x43   : > { %v241_v35 = vld [vmem:[#allocation2 + $0xb0] sm:$0xff]  ;;  %v246_v39 = vld [vmem:[#allocation2 + $0xd8] sm:$0xff]  ;;  %694 = vmatpush1.bf16.msra.mxu1 %v693_v25  ;;  %644 = vmatprep.subr.bf16.mxu0 %v643_v29  ;;  %v647_v42 = vpack.c.bf16 %v248_v38, %v244_v36  ;;  %v252_v48 = vld [vmem:[#allocation2 + $0x108] sm:$0xff]  ;;  %v649_v52 = vpack.c.bf16 %v247_v44, %v243_v43  ;;  %p855_p8 = scmp.ne.s32.totalorder %s1113_s24, %s854_s30 }
  0x44   : > { %v250_v40 = vld [vmem:[#allocation2 + $0xf8] sm:$0xff]  ;;  %v697_v41 = vpack.c.bf16 %v241_v35, %v237_v34  ;;  %v245_v45 = vld [vmem:[#allocation2 + $0xd0] sm:$0xff]  ;;  %696 = vmatprep.subr.bf16.mxu1 %v695_v33  ;;  %v256_v49 = vld [vmem:[#allocation2 + $0x128] sm:$0xff] }
  0x45   : > { %v699_v46 = vpack.c.bf16 %v250_v40, %v246_v39  ;;  %v249_v47 = vld [vmem:[#allocation2 + $0xf0] sm:$0xff]  ;;  %v254_v50 = vld [vmem:[#allocation2 + $0x118] sm:$0xff]  ;;  %v651_v54 = vpack.c.bf16 %v256_v49, %v252_v48  ;;  %v251_v55 = vld [vmem:[#allocation2 + $0x100] sm:$0xff]  ;;  %p856_p12 = pnand %p855_p8, %p1181_p10 }
  0x46   : > { %212 = vrot.lane.b32.xlu0 %v626_v4, %s958_s4  ;;  %v258_v51 = vld [vmem:[#allocation2 + $0x138] sm:$0xff]  ;;  %646 = vmatpush1.bf16.msra.mxu0 %v645_v37  ;;  %v701_v53 = vpack.c.bf16 %v249_v47, %v245_v45  ;;  %v255_v56 = vld [vmem:[#allocation2 + $0x120] sm:$0xff]  ;;  %v253_v57 = vld [vmem:[#allocation2 + $0x110] sm:$0xff]  ;;  %s959_s4 = smov [#allocation5]  }
  0x47   : > { %698 = vmatpush1.bf16.msra.mxu1 %v697_v41  ;;  %648 = vmatprep.subr.bf16.mxu0 %v647_v42  ;;  %v703_v58 = vpack.c.bf16 %v258_v51, %v254_v50  ;;  %v257_v59 = vld [vmem:[#allocation2 + $0x130] sm:$0xff]  ;;  %v260_v60 = vld [vmem:[#allocation2 + $0x148] sm:$0xff]  ;;  %v262_v62 = vld [vmem:[#allocation2 + $0x158] sm:$0xff]  ;;  %v653_v0 = vpack.c.bf16 %v255_v56, %v251_v55  ;;  %p857_p0 = pneg %p856_p12  ;;  %s858_s29 = sshll.u32 %s959_s4, 4  ;;  %s859_s29 = int_to_ptr.vmem [resolvable:$false] %s858_s29 }
  0x48   : > { %700 = vmatprep.subr.bf16.mxu1 %v699_v46  ;;  %v264_v61 = vld [vmem:[#allocation2 + $0x168] sm:$0xff]  ;;  %v266_v63 = vld [vmem:[#allocation2 + $0x178] sm:$0xff]  ;;  %v705_v1 = vpack.c.bf16 %v257_v59, %v253_v57  ;;  %v259_v3 = vld [vmem:[#allocation2 + $0x140] sm:$0xff]  ;;  %s860_s6 = scalar_lea.vmem %s859_s29, 1024  ;;  %p861_p2 = scmp.lt.s32.totalorder %s1113_s24, %s859_s29 }
  0x49   : > { %v655_v2 = vpack.c.bf16 %v264_v61, %v260_v60  ;;  %v263_v4 = vld [vmem:[#allocation2 + $0x160] sm:$0xff]  ;;  %v261_v5 = vld [vmem:[#allocation2 + $0x150] sm:$0xff]  ;;  %v707_v6 = vpack.c.bf16 %v266_v63, %v262_v62  ;;  %v268_v8 = vld [vmem:[#allocation2 + $0x188] sm:$0xff]  ;;  %p862_p5 = scmp.lt.s32.totalorder %s860_s6, %s854_s30 }
  0x4a   : > { %650 = vmatpush1.bf16.msra.mxu0 %v649_v52  ;;  %v265_v7 = vld [vmem:[#allocation2 + $0x170] sm:$0xff]  ;;  %v272_v9 = vld [vmem:[#allocation2 + $0x1a8] sm:$0xff]  ;;  %v270_v10 = vld [vmem:[#allocation2 + $0x198] sm:$0xff]  ;;  %v657_v12 = vpack.c.bf16 %v263_v4, %v259_v3 }
  0x4b   : > { %702 = vmatpush1.bf16.msra.mxu1 %v701_v53  ;;  %652 = vmatprep.subr.bf16.mxu0 %v651_v54  ;;  %v274_v11 = vld [vmem:[#allocation2 + $0x1b8] sm:$0xff]  ;;  %v709_v13 = vpack.c.bf16 %v265_v7, %v261_v5  ;;  %v659_v14 = vpack.c.bf16 %v272_v9, %v268_v8  ;;  %v267_v15 = vld [vmem:[#allocation2 + $0x180] sm:$0xff]  ;;  %v269_v17 = vld [vmem:[#allocation2 + $0x190] sm:$0xff]  ;;  %p863_p6 = por %p862_p5, %p861_p2 }
  0x4c   : > { %704 = vmatprep.subr.bf16.mxu1 %v703_v58  ;;  %v271_v16 = vld [vmem:[#allocation2 + $0x1a0] sm:$0xff]  ;;  %v711_v18 = vpack.c.bf16 %v274_v11, %v270_v10  ;;  %v273_v19 = vld [vmem:[#allocation2 + $0x1b0] sm:$0xff]  ;;  %v276_v20 = vld [vmem:[#allocation2 + $0x1c8] sm:$0xff] }
  0x4d   : > { %v280_v21 = vld [vmem:[#allocation2 + $0x1e8] sm:$0xff]  ;;  %v278_v22 = vld [vmem:[#allocation2 + $0x1d8] sm:$0xff]  ;;  %v661_v24 = vpack.c.bf16 %v271_v16, %v267_v15  ;;  %v713_v25 = vpack.c.bf16 %v273_v19, %v269_v17  ;;  %v275_v27 = vld [vmem:[#allocation2 + $0x1c0] sm:$0xff]  ;;  %p864_p7 = pnand %p863_p6, %p857_p0 }
  0x4e   : > { %654 = vmatpush1.bf16.msra.mxu0 %v653_v0  ;;  %v282_v23 = vld [vmem:[#allocation2 + $0x1f8] sm:$0xff]  ;;  %v663_v26 = vpack.c.bf16 %v280_v21, %v276_v20  ;;  %v279_v28 = vld [vmem:[#allocation2 + $0x1e0] sm:$0xff]  ;;  %v277_v29 = vld [vmem:[#allocation2 + $0x1d0] sm:$0xff] }
  0x4f   : > { %706 = vmatpush1.bf16.msra.mxu1 %v705_v1  ;;  %656 = vmatprep.subr.bf16.mxu0 %v655_v2  ;;  %v715_v30 = vpack.c.bf16 %v282_v23, %v278_v22  ;;  %v281_v31 = vld [vmem:[#allocation2 + $0x1f0] sm:$0xff]  ;;  %v284_v32 = vld [vmem:[#allocation2 + $0x208] sm:$0xff]  ;;  %v286_v34 = vld [vmem:[#allocation2 + $0x218] sm:$0xff]  ;;  %v665_v36 = vpack.c.bf16 %v279_v28, %v275_v27 }
  0x50   : > { %708 = vmatprep.subr.bf16.mxu1 %v707_v6  ;;  %v288_v33 = vld [vmem:[#allocation2 + $0x228] sm:$0xff]  ;;  %v290_v35 = vld [vmem:[#allocation2 + $0x238] sm:$0xff]  ;;  %v717_v37 = vpack.c.bf16 %v281_v31, %v277_v29  ;;  %v283_v39 = vld [vmem:[#allocation2 + $0x200] sm:$0xff] }
  0x51   : > { %v667_v38 = vpack.c.bf16 %v288_v33, %v284_v32  ;;  %v287_v40 = vld [vmem:[#allocation2 + $0x220] sm:$0xff]  ;;  %v285_v41 = vld [vmem:[#allocation2 + $0x210] sm:$0xff]  ;;  %v719_v42 = vpack.c.bf16 %v290_v35, %v286_v34  ;;  %v292_v44 = vld [vmem:[#allocation2 + $0x248] sm:$0xff] }
  0x52   : > { %658 = vmatpush1.bf16.msra.mxu0 %v657_v12  ;;  %v289_v43 = vld [vmem:[#allocation2 + $0x230] sm:$0xff]  ;;  %v296_v45 = vld [vmem:[#allocation2 + $0x268] sm:$0xff]  ;;  %v294_v46 = vld [vmem:[#allocation2 + $0x258] sm:$0xff]  ;;  %v669_v48 = vpack.c.bf16 %v287_v40, %v283_v39  ;;  %v329_v39 = vlaneseq }
  0x53   : > { %710 = vmatpush1.bf16.msra.mxu1 %v709_v13  ;;  %660 = vmatprep.subr.bf16.mxu0 %v659_v14  ;;  %v298_v47 = vld [vmem:[#allocation2 + $0x278] sm:$0xff]  ;;  %v721_v49 = vpack.c.bf16 %v289_v43, %v285_v41  ;;  %v671_v50 = vpack.c.bf16 %v296_v45, %v292_v44  ;;  %v291_v51 = vld [vmem:[#allocation2 + $0x240] sm:$0xff]  ;;  %v293_v53 = vld [vmem:[#allocation2 + $0x250] sm:$0xff] }
  0x54   : > { %712 = vmatprep.subr.bf16.mxu1 %v711_v18  ;;  %v295_v52 = vld [vmem:[#allocation2 + $0x260] sm:$0xff]  ;;  %v723_v54 = vpack.c.bf16 %v298_v47, %v294_v46  ;;  %v297_v55 = vld [vmem:[#allocation2 + $0x270] sm:$0xff]  ;;  %v300_v56 = vld [vmem:[#allocation2 + $0x288] sm:$0xff]  ;;  %v330_v40 = vshrl.u32 %v329_v39, 7 }
  0x55   : > { %v304_v57 = vld [vmem:[#allocation2 + $0x2a8] sm:$0xff]  ;;  %v302_v58 = vld [vmem:[#allocation2 + $0x298] sm:$0xff]  ;;  %v673_v60 = vpack.c.bf16 %v295_v52, %v291_v51  ;;  %v725_v61 = vpack.c.bf16 %v297_v55, %v293_v53  ;;  %v299_v63 = vld [vmem:[#allocation2 + $0x280] sm:$0xff] }
  0x56   : > { %662 = vmatpush1.bf16.msra.mxu0 %v661_v24  ;;  %v306_v59 = vld [vmem:[#allocation2 + $0x2b8] sm:$0xff]  ;;  %v675_v62 = vpack.c.bf16 %v304_v57, %v300_v56  ;;  %v303_v0 = vld [vmem:[#allocation2 + $0x2a0] sm:$0xff]  ;;  %v301_v1 = vld [vmem:[#allocation2 + $0x290] sm:$0xff]  ;;  %v331_v41 = vsub.s32 0, %v330_v40  ;;  %v335_v44 = vsub.s32 1, %v330_v40  ;;  %v343_v45 = vsub.s32 3, %v330_v40 }
  0x57   : > { %714 = vmatpush1.bf16.msra.mxu1 %v713_v25  ;;  %664 = vmatprep.subr.bf16.mxu0 %v663_v26  ;;  %v727_v2 = vpack.c.bf16 %v306_v59, %v302_v58  ;;  %v305_v3 = vld [vmem:[#allocation2 + $0x2b0] sm:$0xff]  ;;  %v308_v4 = vld [vmem:[#allocation2 + $0x2c8] sm:$0xff]  ;;  %v310_v6 = vld [vmem:[#allocation2 + $0x2d8] sm:$0xff]  ;;  %v677_v8 = vpack.c.bf16 %v303_v0, %v299_v63 }
  0x58   : > { %716 = vmatprep.subr.bf16.mxu1 %v715_v30  ;;  %v312_v5 = vld [vmem:[#allocation2 + $0x2e8] sm:$0xff]  ;;  %v314_v7 = vld [vmem:[#allocation2 + $0x2f8] sm:$0xff]  ;;  %v729_v9 = vpack.c.bf16 %v305_v3, %v301_v1  ;;  %v307_v11 = vld [vmem:[#allocation2 + $0x2c0] sm:$0xff] }
  0x59   : > { %v679_v10 = vpack.c.bf16 %v312_v5, %v308_v4  ;;  %v311_v12 = vld [vmem:[#allocation2 + $0x2e0] sm:$0xff]  ;;  %v309_v13 = vld [vmem:[#allocation2 + $0x2d0] sm:$0xff]  ;;  %v731_v14 = vpack.c.bf16 %v314_v7, %v310_v6  ;;  %v316_v16 = vld [vmem:[#allocation2 + $0x308] sm:$0xff] }
  0x5a   : > { %666 = vmatpush1.bf16.msra.mxu0 %v665_v36  ;;  %v313_v15 = vld [vmem:[#allocation2 + $0x2f0] sm:$0xff]  ;;  %v320_v17 = vld [vmem:[#allocation2 + $0x328] sm:$0xff]  ;;  %v318_v18 = vld [vmem:[#allocation2 + $0x318] sm:$0xff]  ;;  %v681_v20 = vpack.c.bf16 %v311_v12, %v307_v11 }
  0x5b   : > { %718 = vmatpush1.bf16.msra.mxu1 %v717_v37  ;;  %668 = vmatprep.subr.bf16.mxu0 %v667_v38  ;;  %v322_v19 = vld [vmem:[#allocation2 + $0x338] sm:$0xff]  ;;  %v733_v21 = vpack.c.bf16 %v313_v15, %v309_v13  ;;  %v683_v22 = vpack.c.bf16 %v320_v17, %v316_v16  ;;  %v315_v23 = vld [vmem:[#allocation2 + $0x300] sm:$0xff]  ;;  %v317_v26 = vld [vmem:[#allocation2 + $0x310] sm:$0xff] }
  0x5c   : > { %720 = vmatprep.subr.bf16.mxu1 %v719_v42  ;;  %v319_v24 = vld [vmem:[#allocation2 + $0x320] sm:$0xff]  ;;  %v735_v25 = vpack.c.bf16 %v322_v19, %v318_v18  ;;  %v321_v27 = vld [vmem:[#allocation2 + $0x330] sm:$0xff]  ;;  %v324_v30 = vld [vmem:[#allocation2 + $0x348] sm:$0xff]  ;;  %v339_v42 = vsub.s32 2, %v330_v40 }
  0x5d   : > { %v685_v28 = vpack.c.bf16 %v319_v24, %v315_v23  ;;  %v737_v29 = vpack.c.bf16 %v321_v27, %v317_v26  ;;  %v326_v31 = vld [vmem:[#allocation2 + $0x358] sm:$0xff]  ;;  %v323_v32 = vld [vmem:[#allocation2 + $0x340] sm:$0xff]  ;;  %v325_v33 = vld [vmem:[#allocation2 + $0x350] sm:$0xff] }
  0x5e   : > { %670 = vmatpush1.bf16.msra.mxu0 %v669_v48  ;;  %v200_v35 = vld [vmem:[%s1095_s25] sm:$0xff]  ;;  %s504_s25 = scalar_lea.sflag [#allocation4], %s190_s28 }
  0x5f   : > { %722 = vmatpush1.bf16.msra.mxu1 %v721_v49  ;;  %672 = vmatprep.subr.bf16.mxu0 %v671_v50  ;;  %v327_v43 = vld [vmem:[%s1168_s2] sm:$0xf] }
  0x60   : > { %724 = vmatprep.subr.bf16.mxu1 %v723_v54  ;;  %v332_v46 = vrot.slane %v327_v43, %v331_v41  ;;  %v340_v47 = vrot.slane %v327_v43, %v339_v42  ;;  %v336_v48 = vrot.slane %v327_v43, %v335_v44  ;;  %v344_v49 = vrot.slane %v327_v43, %v343_v45 }
  0x62   : > { %674 = vmatpush1.bf16.msra.mxu0 %v673_v60 }
  0x63   : > { %726 = vmatpush1.bf16.msra.mxu1 %v725_v61  ;;  %676 = vmatprep.subr.bf16.mxu0 %v675_v62 }
  0x64   : > { %728 = vmatprep.subr.bf16.mxu1 %v727_v2 }
  0x66   : > { %678 = vmatpush1.bf16.msra.mxu0 %v677_v8 }
  0x67   : > { %730 = vmatpush1.bf16.msra.mxu1 %v729_v9  ;;  %680 = vmatprep.subr.bf16.mxu0 %v679_v10 }
  0x68   : > { %732 = vmatprep.subr.bf16.mxu1 %v731_v14 }
  0x6a   : > { %682 = vmatpush1.bf16.msra.mxu0 %v681_v20 }
  0x6b   : > { %734 = vmatpush1.bf16.msra.mxu1 %v733_v21  ;;  %684 = vmatprep.subr.bf16.mxu0 %v683_v22 }
  0x6c   : > { %736 = vmatprep.subr.bf16.mxu1 %v735_v25 }
  0x6e   : > { %686 = vmatpush1.bf16.msra.mxu0 %v685_v28 }
  0x6f   : > { %738 = vmatpush1.bf16.msra.mxu1 %v737_v29  ;;  %405 = vmatprep.subr.mxu0 %v324_v30 }
  0x70   : > { %476 = vmatprep.subr.mxu1 %v326_v31 }
  0x72   : > { %406 = vmatpush1.msra.mxu0 %v323_v32 }
  0x73   : > { %477 = vmatpush1.msra.mxu1 %v325_v33 }
  0xb4   : > { %v209_v34 = vpop.permute.xlu0 %208 }
  0xb5   : > { %v216_v38 = vsel %vm215_vm2, %v200_v35, %v209_v34 }
  0xb8   : > { %v213_v36 = vpop.permute.xlu0 %212 }
  0xb9   : > { %v218_v37 = vsel %vm217_vm0, %v209_v34, %v213_v36 }
  0xba   : > { %627 = vmatprep.mubr.msk.f32.mxu0 %vm349_vm1, %v218_v37  ;;  %628 = vmatprep.mubr.msk.f32.mxu1 %vm349_vm1, %v218_v37 }
  0xbb   : > { %418 = vmatmul.mubr.f32.vlgmr.msra.gmra.mrb[0].mxu0 %v216_v38  ;;  %489 = vmatmul.mubr.f32.vlgmr.msra.gmra.mrb[0].mxu1 %v216_v38 }
 0x18e   : > { %v419_v50 = vpop.f32.mrb[0].mxu0  ;;  %v490_v51 = vpop.f32.mrb[0].mxu1 }
 0x18f   : > { %v420_v52 = vadd.f32 %v419_v50, %v332_v46  ;;  %v491_v53 = vadd.f32 %v490_v51, %v340_v47  ;;  %v421_v54 = vpop.f32.mrb[1].mxu0  ;;  %v492_v55 = vpop.f32.mrb[1].mxu1 }
 0x190   : > { %v422_v56 = vadd.f32 %v421_v54, %v336_v48  ;;  %v493_v57 = vadd.f32 %v492_v55, %v344_v49 }
 0x191   : > { %v495_v58 = vmax.f32 %v420_v52, 0.0  ;;  %v497_v59 = vmax.f32 %v491_v53, 0.0 }
 0x192   : > { %v496_v60 = vmax.f32 %v422_v56, 0.0  ;;  %v498_v61 = vmax.f32 %v493_v57, 0.0 }
 0x193   : > { %499 = vst [vmem:[%s192_s21] sm:$0xff] %v495_v58  ;;  %501 = vst [vmem:[%s192_s21 + $0x10] sm:$0xff] %v497_v59 }
 0x194   : > { %500 = vst [vmem:[%s192_s21 + $0x8] sm:$0xff] %v496_v60  ;;  %502 = vst [vmem:[%s192_s21 + $0x18] sm:$0xff] %v498_v61 }
 0x195   : > { %867 = shalt.err (!%p864_p7)
}
 0x196   : > { %s868_s28 = scalar_lea.hbm %s1111_s7, 512  ;;  %s872_s11 = scalar_lea.hbm %s1169_s3, 2048 }
 0x197   : > { %p869_p9 = scmp.ne.s32.totalorder %s1111_s7, %s868_s28  ;;  %p873_p1 = scmp.lt.u32.totalorder %s1111_s7, %s1169_s3 }
 0x198   : > { %p874_p4 = scmp.lt.u32.totalorder %s872_s11, %s868_s28  ;;  %p876_p8 = scmp.lt.u32.totalorder %s868_s28, %s1111_s7 }
 0x199   : > { %p870_p11 = pnand %p869_p9, %p1181_p10 }
 0x19a   : > { %p875_p3 = por %p874_p4, %p873_p1 }
 0x19b   : > { %p871_p13 = pneg %p870_p11 }
 0x19c   : > { %p877_p12 = por %p876_p8, %p875_p3 }
 0x19e   : > { %p878_p0 = pnand %p877_p12, %p871_p13 }
 0x1a0   : > { %881 = shalt.err (!%p878_p0)
}
 0x1a1   : > { %744 = dma.vmem_to_hbm [thread:$0]  (%p1181_p10), %s1113_s24, 512, %s1111_s7, %s504_s25  }
 0x1a2 PF: > { %p756_p2 = scmp.ge.s32.totalorder %s952_s19, 2  ;;  %s532_s21 = sand.u32 1, %s924_s12  }
 0x1a3   : > { %p1182_p5 = scmp.ne.s32.totalorder %s1175_s27, 0  ;;  %s533_s15 = scalar_lea.sflag [#allocation4], %s532_s21 }
 0x1a5   : > { %p751_p6 = pnand %p756_p2, %p1182_p5 }
 0x1a7   : > { %919 = dma.done.wait (!%p751_p6), %s533_s15, 512  }
 0x1a8   : > { %921 = vsyncadd (!%p751_p6), %s533_s15, 4294966784  ;;  %s17_s19 = sadd.s32 1, %s952_s19   ;;  %s1183_s12 = smov %s928_s13 }
 0x1a9   : > { %p14_p7 = scmp.ge.s32.totalorder %s17_s19, 6   ;;  %s1184_s13 = smov %s932_s14 }
 0x1aa   : > { %s1185_s14 = smov %s1059_s5  ;;  %s1186_s15 = smov %s944_s17 }
 0x1ab   : > { %s1187_s16 = smov %s948_s18  ;;  %s1188_s17 = smov %s1191_s22 }
 0x1ac   : > { %s1189_s18 = smov %s1195_s23  ;;  %16 = sbr.rel (!%p14_p7) target bundleno = 6 (0x6), region = 75 }
 0x1b3   :  { %538 = vsyncpa [#allocation3], 1 }
 0x1b4   :  { %540 = vsyncpa [#allocation3 + $0x1], 1 }
 0x1b5   :  { %541 = vsyncpa [#allocation4], 1 }
 0x1b6   :  { %543 = vsyncpa [#allocation4 + $0x1], 1 }

</bundles_post_ra>
